<compile_context>
chip_gen: v7x
topology: tpu7x:2x2x1
jax: 0.10.0
libtpu: 0.0.40
codegen_flags: <defaults>
</compile_context>

<pallas_src>
import functools

import jax
import jax.numpy as jnp
from jax.experimental import pallas as pl
from jax.experimental.pallas import tpu as pltpu

_HIDDEN = 512
_VMEM_LIMIT = 32 * 1024 * 1024   # safe on v7x (64 MiB physical), tiny tiles anyway


def _round_up(x, m):
    return ((x + m - 1) // m) * m


def _pick_tm(m):
    # bf16 packs two rows per sublane -> keep row tiles multiples of 16.
    if m >= 512:
        return 256          # bigger tiles amortize grid-step overhead (v6e/v7x)
    if m >= 128:
        return 128
    return _round_up(max(m, 1), 16)


# ---------------------------------------------------------------------------
# Kernel 1: single-K-block matmul + bias + optional ReLU (conv1 / conv2).
# K = kh*kw*C_real always fits one VMEM tile for this net, so there is no
# accumulator scratch and no init/finalize branching at all.
# ---------------------------------------------------------------------------
def _matmul_bias_act_kernel(a_ref, w_ref, b_ref, o_ref, *, relu):
    y = jnp.dot(a_ref[...], w_ref[...], preferred_element_type=jnp.float32)
    y = y + b_ref[...]                      # (1, tn) broadcast, f32 epilogue
    if relu:
        y = jnp.maximum(y, 0.0)
    o_ref[...] = y.astype(o_ref.dtype)


def matmul_bias_act(a, w, b_row, *, relu, out_dtype, k_real, n_real):
    """a: [M, K] (any float), w: [Kp, Np] bf16 (K <= Kp, zero-padded K tail,
    Np 128-padded), b_row: [1, Np] f32."""
    M, K = a.shape
    Kp, Np = w.shape
    assert Kp % 128 == 0 and Np % 128 == 0 and Kp >= K, (Kp, Np, K)

    a = a.astype(jnp.bfloat16)
    if Kp > K:
        a = jnp.pad(a, ((0, 0), (0, Kp - K)))

    tm = _pick_tm(M)
    Mp = _round_up(M, tm)
    if Mp > M:
        a = jnp.pad(a, ((0, Mp - M), (0, 0)))
    tn = 128                                 # every N here is exactly 128-padded
    grid = (Mp // tm, Np // tn)

    cost = pl.CostEstimate(
        flops=2 * M * k_real * n_real,
        transcendentals=0,
        bytes_accessed=(M * k_real * 2 + k_real * n_real * 2
                        + M * n_real * jnp.dtype(out_dtype).itemsize),
    )

    out = pl.pallas_call(
        functools.partial(_matmul_bias_act_kernel, relu=relu),
        out_shape=jax.ShapeDtypeStruct((Mp, Np), out_dtype),
        grid_spec=pltpu.PrefetchScalarGridSpec(
            num_scalar_prefetch=0,
            grid=grid,
            in_specs=[
                pl.BlockSpec((tm, Kp), lambda i, j: (i, 0)),
                pl.BlockSpec((Kp, tn), lambda i, j: (0, j)),
                pl.BlockSpec((1, tn), lambda i, j: (0, j)),
            ],
            out_specs=pl.BlockSpec((tm, tn), lambda i, j: (i, j)),
        ),
        compiler_params=pltpu.CompilerParams(
            dimension_semantics=("parallel", "parallel"),
            vmem_limit_bytes=_VMEM_LIMIT,
        ),
        cost_estimate=cost,
    )(a, w, b_row.astype(jnp.float32))
    return out[:M]


# ---------------------------------------------------------------------------
# Conv2d (valid padding) = im2col over REAL channels (XLA glue) + Pallas matmul.
# Output channel (lane) dim stays 128-padded (unmasked stores); the next layer
# slices back to the real channel count before its own im2col.
# ---------------------------------------------------------------------------
def conv2d_pallas(x_nhwc, w_mat, b_row, *, kh, kw, stride, c_real, n_real,
                  relu=True, out_dtype=jnp.bfloat16):
    B, H, W, _ = x_nhwc.shape
    oh = (H - kh) // stride + 1
    ow = (W - kw) // stride + 1

    # TODO(synk): move the im2col patch extraction into the Pallas kernel
    # (grid axis over kh*kw positions); kept in XLA because the NHWC layout
    # with tiny C is vreg-hostile for in-kernel strided slicing.
    patches = []
    for i in range(kh):
        for j in range(kw):
            patches.append(
                x_nhwc[:, i:i + stride * oh:stride,
                       j:j + stride * ow:stride, :c_real])
    cols = jnp.stack(patches, axis=3).astype(jnp.bfloat16)
    cols = cols.reshape(B * oh * ow, kh * kw * c_real)

    out = matmul_bias_act(cols, w_mat, b_row, relu=relu, out_dtype=out_dtype,
                          k_real=kh * kw * c_real, n_real=n_real)
    return out.reshape(B, oh, ow, w_mat.shape[1])        # NHWC, channels 128-padded


# ---------------------------------------------------------------------------
# Kernel 2: fused conv3 + fc1 + ReLU + fc2.
# Grid = (batch blocks, conv3 output spatial positions). Per step:
#   c      = relu(cols3[p] @ W3 + b3)            # conv3 for one spatial position
#   acc   += c @ W1[p]                           # partial fc1 (K = 64 per step)
# Finalize (last p):
#   h = relu(acc + gb)       where gb = goal @ W1_goal + b1 (precomputed, f32)
#   q = h @ W2 + b2
# ---------------------------------------------------------------------------
def _conv3_fc_head_kernel(cols_ref, w3_ref, b3_ref, w1_ref, gb_ref, w2_ref,
                          b2_ref, out_ref, acc_ref):
    p = pl.program_id(1)

    c = jnp.dot(cols_ref[0], w3_ref[...], preferred_element_type=jnp.float32)
    c = jnp.maximum(c + b3_ref[...], 0.0)
    contrib = jnp.dot(c.astype(w1_ref.dtype), w1_ref[0],
                      preferred_element_type=jnp.float32)

    @pl.when(p == 0)
    def _init():                             # seed accumulator (no zero-fill pass)
        acc_ref[...] = contrib

    @pl.when(p > 0)
    def _accum():
        acc_ref[...] += contrib

    @pl.when(p == pl.num_programs(1) - 1)
    def _finalize():
        h = jnp.maximum(acc_ref[...] + gb_ref[...], 0.0)
        q = jnp.dot(h.astype(w2_ref.dtype), w2_ref[...],
                    preferred_element_type=jnp.float32) + b2_ref[...]
        out_ref[...] = q.astype(out_ref.dtype)


def conv3_fc_head_pallas(x2_nhwc, goal, params, *, num_actions,
                         kh=3, kw=3, stride=1, c_real=64):
    w3, b3 = params["c3_w"], params["c3_b"]
    w1c = params["fc1_w_conv"]
    w1g, b1 = params["fc1_w_goal"], params["fc1_b"]
    w2, b2 = params["fc2_w"], params["fc2_b"]

    B, H, W, _ = x2_nhwc.shape
    oh = (H - kh) // stride + 1
    ow = (W - kw) // stride + 1
    s = oh * ow
    Kp3, C3 = w3.shape                        # C3 = 64 real conv3 out-channels
    Hn = w1c.shape[-1]
    Np = w2.shape[1]
    k3 = kh * kw * c_real

    # conv3 im2col laid out (spatial, batch, K): spatial is the reduction grid
    # axis, batch rows stay sublane-friendly, K lane-dense.
    patches = []
    for i in range(kh):
        for j in range(kw):
            patches.append(
                x2_nhwc[:, i:i + stride * oh:stride,
                        j:j + stride * ow:stride, :c_real])
    cols = jnp.stack(patches, axis=3).astype(jnp.bfloat16)
    cols = cols.reshape(B, s, k3)
    if Kp3 > k3:
        cols = jnp.pad(cols, ((0, 0), (0, 0), (0, Kp3 - k3)))
    cols = jnp.transpose(cols, (1, 0, 2))                    # (s, B, Kp3)

    tb = 128 if B >= 128 else _round_up(max(B, 1), 16)
    Bp = _round_up(B, tb)
    if Bp > B:
        cols = jnp.pad(cols, ((0, 0), (0, Bp - B), (0, 0)))

    # Goal contribution + fc1 bias folded into one per-row f32 bias (exact f32
    # math; removes the in-kernel goal matmul and its VMEM operands).
    gb = goal.astype(jnp.float32) @ w1g + b1                 # (B, 512)
    gb = jnp.pad(gb, ((0, Bp - B), (0, 0)))

    cost = pl.CostEstimate(
        flops=2 * B * s * (k3 * C3 + C3 * Hn) + 2 * B * Hn * num_actions,
        transcendentals=0,
        bytes_accessed=(B * s * k3 * 2 + Kp3 * C3 * 2 + s * C3 * Hn * 2
                        + Hn * Np * 2 + Bp * Hn * 4 + Bp * Np * 4),
    )

    out = pl.pallas_call(
        _conv3_fc_head_kernel,
        out_shape=jax.ShapeDtypeStruct((Bp, Np), jnp.float32),
        grid_spec=pltpu.PrefetchScalarGridSpec(
            num_scalar_prefetch=0,
            grid=(Bp // tb, s),
            in_specs=[
                pl.BlockSpec((1, tb, Kp3), lambda i, p: (p, i, 0)),  # conv3 im2col
                pl.BlockSpec((Kp3, C3), lambda i, p: (0, 0)),        # conv3 W
                pl.BlockSpec((1, C3), lambda i, p: (0, 0)),          # conv3 b
                pl.BlockSpec((1, C3, Hn), lambda i, p: (p, 0, 0)),   # fc1 W slice
                pl.BlockSpec((tb, Hn), lambda i, p: (i, 0)),         # goal@W1g + b1
                pl.BlockSpec((Hn, Np), lambda i, p: (0, 0)),         # fc2 W
                pl.BlockSpec((1, Np), lambda i, p: (0, 0)),          # fc2 b
            ],
            out_specs=pl.BlockSpec((tb, Np), lambda i, p: (i, 0)),
            scratch_shapes=[pltpu.VMEM((tb, Hn), jnp.float32)],
        ),
        compiler_params=pltpu.CompilerParams(
            dimension_semantics=("parallel", "arbitrary"),
            vmem_limit_bytes=_VMEM_LIMIT,
        ),
        cost_estimate=cost,
    )(cols, w3, b3, w1c, gb, w2, b2)
    return out[:B, :num_actions]


# ---------------------------------------------------------------------------
# Parameter construction (PyTorch-default-like uniform init), prepared once
# into matmul-friendly layouts (bf16 weights, f32 biases).
# ---------------------------------------------------------------------------
def _uniform(key, shape, fan_in):
    bound = 1.0 / jnp.sqrt(jnp.float32(fan_in))
    return jax.random.uniform(key, shape, jnp.float32, -bound, bound)


def init_dqn_params(key, input_shape, num_actions):
    C, H, W = input_shape
    h1, w1 = (H - 8) // 4 + 1, (W - 8) // 4 + 1
    h2, w2 = (h1 - 4) // 2 + 1, (w1 - 4) // 2 + 1
    h3, w3 = (h2 - 3) // 1 + 1, (w2 - 3) // 1 + 1
    conv_out_size = 64 * h3 * w3
    assert num_actions <= 128

    ks = jax.random.split(key, 10)

    def conv_weight_mat(w_oihw, *, pad_out):
        # (O, Ci, kh, kw) -> (kh*kw*Ci, O); pad K tail to x128; optionally pad
        # the output/lane dim to 128 (conv1/conv2 whose outputs hit HBM).
        O, Ci, kh, kw = w_oihw.shape
        wm = jnp.transpose(w_oihw, (2, 3, 1, 0)).reshape(kh * kw * Ci, O)
        kp = _round_up(wm.shape[0], 128)
        op = _round_up(O, 128) if pad_out else O
        wm = jnp.pad(wm, ((0, kp - wm.shape[0]), (0, op - O)))
        return wm.astype(jnp.bfloat16)

    def bias_row(b, pad_to):
        return jnp.pad(b, (0, pad_to - b.shape[0])).reshape(1, pad_to).astype(jnp.float32)

    c1_w = _uniform(ks[0], (32, C, 8, 8), C * 8 * 8)
    c1_b = _uniform(ks[1], (32,), C * 8 * 8)
    c2_w = _uniform(ks[2], (64, 32, 4, 4), 32 * 4 * 4)
    c2_b = _uniform(ks[3], (64,), 32 * 4 * 4)
    c3_w = _uniform(ks[4], (64, 64, 3, 3), 64 * 3 * 3)
    c3_b = _uniform(ks[5], (64,), 64 * 3 * 3)

    fc1_in = conv_out_size + 3
    fc1_w = _uniform(ks[6], (fc1_in, _HIDDEN), fc1_in)       # (in, out) layout
    fc1_b = _uniform(ks[7], (_HIDDEN,), fc1_in)
    fc2_w = _uniform(ks[8], (_HIDDEN, num_actions), _HIDDEN)
    fc2_b = _uniform(ks[9], (num_actions,), _HIDDEN)

    # torch flattens conv3 NCHW output in (c, h, w) order; the fused head
    # consumes it as per-spatial-position slices over 64 channels, so permute
    # the fc1 conv rows to (h, w, c) and reshape to (h*w, 64, 512).
    wc = fc1_w[:conv_out_size].reshape(64, h3, w3, _HIDDEN)
    wc = jnp.transpose(wc, (1, 2, 0, 3)).reshape(h3 * w3, 64, _HIDDEN)

    na_pad = _round_up(num_actions, 128)

    params = {
        "c1_w": conv_weight_mat(c1_w, pad_out=True),          # (256, 128)
        "c1_b": bias_row(c1_b, 128),
        "c2_w": conv_weight_mat(c2_w, pad_out=True),          # (512, 128)
        "c2_b": bias_row(c2_b, 128),
        "c3_w": conv_weight_mat(c3_w, pad_out=False),         # (640, 64) stays in VMEM
        "c3_b": c3_b.reshape(1, 64).astype(jnp.float32),
        "fc1_w_conv": wc.astype(jnp.bfloat16),                # (h3*w3, 64, 512)
        "fc1_w_goal": fc1_w[conv_out_size:].astype(jnp.float32),  # (3, 512) exact f32
        "fc1_b": fc1_b.astype(jnp.float32),                   # (512,)
        "fc2_w": jnp.pad(fc2_w, ((0, 0), (0, na_pad - num_actions))).astype(jnp.bfloat16),
        "fc2_b": jnp.pad(fc2_b, (0, na_pad - num_actions)).reshape(1, na_pad).astype(jnp.float32),
    }
    return params, conv_out_size


# ---------------------------------------------------------------------------
# Forward pass (mirrors DQN.forward).
# ---------------------------------------------------------------------------
def dqn_forward(params, state_and_goal, *, num_actions):
    state = state_and_goal[:, 0:3, :, :]                  # [B, 3, H, W]
    goal = state_and_goal[:, -1, 0, :3]                   # [B, 3]

    x = jnp.transpose(state, (0, 2, 3, 1))                # NHWC once for the trunk
    x = conv2d_pallas(x, params["c1_w"], params["c1_b"],
                      kh=8, kw=8, stride=4, c_real=3, n_real=32)
    x = conv2d_pallas(x, params["c2_w"], params["c2_b"],
                      kh=4, kw=4, stride=2, c_real=32, n_real=64)
    # conv3 + goal-conditioned FC head in a single fused pallas_call.
    return conv3_fc_head_pallas(x, goal, params, num_actions=num_actions)


if __name__ == "__main__":
    # Small but conv-valid shapes: 36x36 -> 8x8 -> 3x3 -> 1x1, conv_out = 64.
    input_shape = (3, 36, 36)
    num_actions = 4
    batch = 2

    key = jax.random.PRNGKey(0)
    pkey, xkey = jax.random.split(key)
    params, conv_out_size = init_dqn_params(pkey, input_shape, num_actions)

    # Input has one extra channel carrying the goal in [b, -1, 0, :3].
    state_and_goal = jax.random.normal(
        xkey, (batch, input_shape[0] + 1, input_shape[1], input_shape[2]),
        dtype=jnp.float32)

    fwd = jax.jit(functools.partial(dqn_forward, num_actions=num_actions))
    out = jax.block_until_ready(fwd(params, state_and_goal))
    assert out.shape == (batch, num_actions), out.shape
    assert out.dtype == jnp.float32
    print("KERNEL_OK")
</pallas_src>

<mosaic_0001>
module attributes {stable_mosaic.version = 11 : i64} {
  func.func @_matmul_bias_act_kernel(%arg0: i32, %arg1: i32, %arg2: memref<128x256xbf16, #tpu.memory_space<vmem>>, %arg3: memref<256x128xbf16, #tpu.memory_space<vmem>>, %arg4: memref<1x128xf32, #tpu.memory_space<vmem>>, %arg5: memref<128x128xbf16, #tpu.memory_space<vmem>>) attributes {dimension_semantics = [#tpu.dimension_semantics<parallel>, #tpu.dimension_semantics<parallel>], iteration_bounds = array<i64: 1, 1>, scalar_prefetch = 0 : i64, scratch_operands = 0 : i64, tpu.core_type = #tpu.core_type<tc>, window_params = [{transform_indices = @transform_0, window_bounds = array<i64: 128, 256>}, {transform_indices = @transform_1, window_bounds = array<i64: 256, 128>}, {transform_indices = @transform_2, window_bounds = array<i64: 1, 128>}, {transform_indices = @transform_3, window_bounds = array<i64: 128, 128>}]} {
    %c0 = arith.constant 0 : index
    %c0_0 = arith.constant 0 : index
    %0 = vector.load %arg2[%c0, %c0_0] : memref<128x256xbf16, #tpu.memory_space<vmem>>, vector<128x256xbf16>
    %c0_1 = arith.constant 0 : index
    %c0_2 = arith.constant 0 : index
    %1 = vector.load %arg3[%c0_1, %c0_2] : memref<256x128xbf16, #tpu.memory_space<vmem>>, vector<256x128xbf16>
    %cst = arith.constant dense<0.000000e+00> : vector<128x128xf32>
    %2 = tpu.matmul %0, %1, %cst {dimension_numbers = #tpu.dot_dimension_numbers<[1], [0], [0], [1], [0, 0, 1, 1], [], []>} : vector<128x256xbf16>, vector<256x128xbf16>, vector<128x128xf32> -> vector<128x128xf32>
    %c0_3 = arith.constant 0 : index
    %c0_4 = arith.constant 0 : index
    %3 = vector.load %arg4[%c0_3, %c0_4] : memref<1x128xf32, #tpu.memory_space<vmem>>, vector<1x128xf32>
    %4 = vector.broadcast %3 : vector<1x128xf32> to vector<128x128xf32>
    %5 = arith.addf %2, %4 : vector<128x128xf32>
    %cst_5 = arith.constant 0.000000e+00 : f32
    %6 = vector.broadcast %cst_5 : f32 to vector<128x128xf32>
    %7 = arith.maximumf %5, %6 : vector<128x128xf32>
    %8 = arith.truncf %7 : vector<128x128xf32> to vector<128x128xbf16>
    %c0_6 = arith.constant 0 : index
    %c0_7 = arith.constant 0 : index
    %9 = vector.load %arg5[%c0_6, %c0_7] : memref<128x128xbf16, #tpu.memory_space<vmem>>, vector<128x128xbf16>
    tpu.vector_store %arg5[%c0_6, %c0_7], %8 {strides = array<i32>} : memref<128x128xbf16, #tpu.memory_space<vmem>>, vector<128x128xbf16>,
    return
  }
  func.func @transform_0(%arg0: i32, %arg1: i32) -> (i32, i32) {
    %c0_i32 = arith.constant 0 : i32
    %c0_i32_0 = arith.constant 0 : i32
    return %arg0, %c0_i32 : i32, i32
  }
  func.func @transform_1(%arg0: i32, %arg1: i32) -> (i32, i32) {
    %c0_i32 = arith.constant 0 : i32
    %c0_i32_0 = arith.constant 0 : i32
    return %c0_i32, %arg1 : i32, i32
  }
  func.func @transform_2(%arg0: i32, %arg1: i32) -> (i32, i32) {
    %c0_i32 = arith.constant 0 : i32
    %c0_i32_0 = arith.constant 0 : i32
    return %c0_i32, %arg1 : i32, i32
  }
  func.func @transform_3(%arg0: i32, %arg1: i32) -> (i32, i32) {
    %c0_i32 = arith.constant 0 : i32
    return %arg0, %arg1 : i32, i32
  }
}

module attributes {stable_mosaic.version = 11 : i64} {
  func.func @_matmul_bias_act_kernel(%arg0: i32, %arg1: i32, %arg2: memref<32x512xbf16, #tpu.memory_space<vmem>>, %arg3: memref<512x128xbf16, #tpu.memory_space<vmem>>, %arg4: memref<1x128xf32, #tpu.memory_space<vmem>>, %arg5: memref<32x128xbf16, #tpu.memory_space<vmem>>) attributes {dimension_semantics = [#tpu.dimension_semantics<parallel>, #tpu.dimension_semantics<parallel>], iteration_bounds = array<i64: 1, 1>, scalar_prefetch = 0 : i64, scratch_operands = 0 : i64, tpu.core_type = #tpu.core_type<tc>, window_params = [{transform_indices = @transform_0, window_bounds = array<i64: 32, 512>}, {transform_indices = @transform_1, window_bounds = array<i64: 512, 128>}, {transform_indices = @transform_2, window_bounds = array<i64: 1, 128>}, {transform_indices = @transform_3, window_bounds = array<i64: 32, 128>}]} {
    %c0 = arith.constant 0 : index
    %c0_0 = arith.constant 0 : index
    %0 = vector.load %arg2[%c0, %c0_0] : memref<32x512xbf16, #tpu.memory_space<vmem>>, vector<32x512xbf16>
    %c0_1 = arith.constant 0 : index
    %c0_2 = arith.constant 0 : index
    %1 = vector.load %arg3[%c0_1, %c0_2] : memref<512x128xbf16, #tpu.memory_space<vmem>>, vector<512x128xbf16>
    %cst = arith.constant dense<0.000000e+00> : vector<32x128xf32>
    %2 = tpu.matmul %0, %1, %cst {dimension_numbers = #tpu.dot_dimension_numbers<[1], [0], [0], [1], [0, 0, 1, 1], [], []>} : vector<32x512xbf16>, vector<512x128xbf16>, vector<32x128xf32> -> vector<32x128xf32>
    %c0_3 = arith.constant 0 : index
    %c0_4 = arith.constant 0 : index
    %3 = vector.load %arg4[%c0_3, %c0_4] : memref<1x128xf32, #tpu.memory_space<vmem>>, vector<1x128xf32>
    %4 = vector.broadcast %3 : vector<1x128xf32> to vector<32x128xf32>
    %5 = arith.addf %2, %4 : vector<32x128xf32>
    %cst_5 = arith.constant 0.000000e+00 : f32
    %6 = vector.broadcast %cst_5 : f32 to vector<32x128xf32>
    %7 = arith.maximumf %5, %6 : vector<32x128xf32>
    %8 = arith.truncf %7 : vector<32x128xf32> to vector<32x128xbf16>
    %c0_6 = arith.constant 0 : index
    %c0_7 = arith.constant 0 : index
    %9 = vector.load %arg5[%c0_6, %c0_7] : memref<32x128xbf16, #tpu.memory_space<vmem>>, vector<32x128xbf16>
    tpu.vector_store %arg5[%c0_6, %c0_7], %8 {strides = array<i32>} : memref<32x128xbf16, #tpu.memory_space<vmem>>, vector<32x128xbf16>,
    return
  }
  func.func @transform_0(%arg0: i32, %arg1: i32) -> (i32, i32) {
    %c0_i32 = arith.constant 0 : i32
    %c0_i32_0 = arith.constant 0 : i32
    return %arg0, %c0_i32 : i32, i32
  }
  func.func @transform_1(%arg0: i32, %arg1: i32) -> (i32, i32) {
    %c0_i32 = arith.constant 0 : i32
    %c0_i32_0 = arith.constant 0 : i32
    return %c0_i32, %arg1 : i32, i32
  }
  func.func @transform_2(%arg0: i32, %arg1: i32) -> (i32, i32) {
    %c0_i32 = arith.constant 0 : i32
    %c0_i32_0 = arith.constant 0 : i32
    return %c0_i32, %arg1 : i32, i32
  }
  func.func @transform_3(%arg0: i32, %arg1: i32) -> (i32, i32) {
    %c0_i32 = arith.constant 0 : i32
    return %arg0, %arg1 : i32, i32
  }
}

module attributes {stable_mosaic.version = 11 : i64} {
  func.func @_conv3_fc_head_kernel(%arg0: i32, %arg1: i32, %arg2: memref<1x16x640xbf16, #tpu.memory_space<vmem>>, %arg3: memref<640x64xbf16, #tpu.memory_space<vmem>>, %arg4: memref<1x64xf32, #tpu.memory_space<vmem>>, %arg5: memref<1x64x512xbf16, #tpu.memory_space<vmem>>, %arg6: memref<16x512xf32, #tpu.memory_space<vmem>>, %arg7: memref<512x128xbf16, #tpu.memory_space<vmem>>, %arg8: memref<1x128xf32, #tpu.memory_space<vmem>>, %arg9: memref<16x128xf32, #tpu.memory_space<vmem>>, %arg10: memref<16x512xf32, #tpu.memory_space<vmem>>) attributes {dimension_semantics = [#tpu.dimension_semantics<parallel>, #tpu.dimension_semantics<arbitrary>], iteration_bounds = array<i64: 1, 1>, scalar_prefetch = 0 : i64, scratch_operands = 1 : i64, tpu.core_type = #tpu.core_type<tc>, window_params = [{transform_indices = @transform_0, window_bounds = array<i64: 1, 16, 640>}, {pipeline_mode = #tpu.pipeline_mode<synchronous>, transform_indices = @transform_1, window_bounds = array<i64: 640, 64>}, {pipeline_mode = #tpu.pipeline_mode<synchronous>, transform_indices = @transform_2, window_bounds = array<i64: 1, 64>}, {transform_indices = @transform_3, window_bounds = array<i64: 1, 64, 512>}, {transform_indices = @transform_4, window_bounds = array<i64: 16, 512>}, {pipeline_mode = #tpu.pipeline_mode<synchronous>, transform_indices = @transform_5, window_bounds = array<i64: 512, 128>}, {pipeline_mode = #tpu.pipeline_mode<synchronous>, transform_indices = @transform_6, window_bounds = array<i64: 1, 128>}, {transform_indices = @transform_7, window_bounds = array<i64: 16, 128>}]} {
    %c0 = arith.constant 0 : index
    %c0_0 = arith.constant 0 : index
    %c0_1 = arith.constant 0 : index
    %0 = vector.load %arg2[%c0, %c0_0, %c0_1] : memref<1x16x640xbf16, #tpu.memory_space<vmem>>, vector<1x16x640xbf16>
    %1 = vector.shape_cast %0 : vector<1x16x640xbf16> to vector<16x640xbf16>
    %c0_2 = arith.constant 0 : index
    %c0_3 = arith.constant 0 : index
    %2 = vector.load %arg3[%c0_2, %c0_3] : memref<640x64xbf16, #tpu.memory_space<vmem>>, vector<640x64xbf16>
    %cst = arith.constant dense<0.000000e+00> : vector<16x64xf32>
    %3 = tpu.matmul %1, %2, %cst {dimension_numbers = #tpu.dot_dimension_numbers<[1], [0], [0], [1], [0, 0, 1, 1], [], []>} : vector<16x640xbf16>, vector<640x64xbf16>, vector<16x64xf32> -> vector<16x64xf32>
    %c0_4 = arith.constant 0 : index
    %c0_5 = arith.constant 0 : index
    %4 = vector.load %arg4[%c0_4, %c0_5] : memref<1x64xf32, #tpu.memory_space<vmem>>, vector<1x64xf32>
    %5 = vector.broadcast %4 : vector<1x64xf32> to vector<16x64xf32>
    %6 = arith.addf %3, %5 : vector<16x64xf32>
    %cst_6 = arith.constant 0.000000e+00 : f32
    %7 = vector.broadcast %cst_6 : f32 to vector<16x64xf32>
    %8 = arith.maximumf %6, %7 : vector<16x64xf32>
    %9 = arith.truncf %8 : vector<16x64xf32> to vector<16x64xbf16>
    %c0_7 = arith.constant 0 : index
    %c0_8 = arith.constant 0 : index
    %c0_9 = arith.constant 0 : index
    %10 = vector.load %arg5[%c0_7, %c0_8, %c0_9] : memref<1x64x512xbf16, #tpu.memory_space<vmem>>, vector<1x64x512xbf16>
    %11 = vector.shape_cast %10 : vector<1x64x512xbf16> to vector<64x512xbf16>
    %cst_10 = arith.constant dense<0.000000e+00> : vector<16x512xf32>
    %12 = tpu.matmul %9, %11, %cst_10 {dimension_numbers = #tpu.dot_dimension_numbers<[1], [0], [0], [1], [0, 0, 1, 1], [], []>} : vector<16x64xbf16>, vector<64x512xbf16>, vector<16x512xf32> -> vector<16x512xf32>
    %c0_i32 = arith.constant 0 : i32
    %13 = arith.cmpi eq, %arg1, %c0_i32 : i32
    %14 = arith.extui %13 : i1 to i32
    %c0_i32_11 = arith.constant 0 : i32
    %15 = arith.cmpi ne, %14, %c0_i32_11 : i32
    scf.if %15 {
      %c0_16 = arith.constant 0 : index
      %c0_17 = arith.constant 0 : index
      %22 = vector.load %arg10[%c0_16, %c0_17] : memref<16x512xf32, #tpu.memory_space<vmem>>, vector<16x512xf32>
      tpu.vector_store %arg10[%c0_16, %c0_17], %12 {strides = array<i32>} : memref<16x512xf32, #tpu.memory_space<vmem>>, vector<16x512xf32>,
    } else {
    }
    %c0_i32_12 = arith.constant 0 : i32
    %16 = arith.cmpi sgt, %arg1, %c0_i32_12 : i32
    %17 = arith.extui %16 : i1 to i32
    %c0_i32_13 = arith.constant 0 : i32
    %18 = arith.cmpi ne, %17, %c0_i32_13 : i32
    scf.if %18 {
      %c0_16 = arith.constant 0 : index
      %c0_17 = arith.constant 0 : index
      %22 = vector.load %arg10[%c0_16, %c0_17] : memref<16x512xf32, #tpu.memory_space<vmem>>, vector<16x512xf32>
      %23 = arith.addf %22, %12 : vector<16x512xf32>
      %c0_18 = arith.constant 0 : index
      %c0_19 = arith.constant 0 : index
      %24 = vector.load %arg10[%c0_18, %c0_19] : memref<16x512xf32, #tpu.memory_space<vmem>>, vector<16x512xf32>
      tpu.vector_store %arg10[%c0_18, %c0_19], %23 {strides = array<i32>} : memref<16x512xf32, #tpu.memory_space<vmem>>, vector<16x512xf32>,
    } else {
    }
    %c0_i32_14 = arith.constant 0 : i32
    %19 = arith.cmpi eq, %arg1, %c0_i32_14 : i32
    %20 = arith.extui %19 : i1 to i32
    %c0_i32_15 = arith.constant 0 : i32
    %21 = arith.cmpi ne, %20, %c0_i32_15 : i32
    scf.if %21 {
      %c0_16 = arith.constant 0 : index
      %c0_17 = arith.constant 0 : index
      %22 = vector.load %arg10[%c0_16, %c0_17] : memref<16x512xf32, #tpu.memory_space<vmem>>, vector<16x512xf32>
      %c0_18 = arith.constant 0 : index
      %c0_19 = arith.constant 0 : index
      %23 = vector.load %arg6[%c0_18, %c0_19] : memref<16x512xf32, #tpu.memory_space<vmem>>, vector<16x512xf32>
      %24 = arith.addf %22, %23 : vector<16x512xf32>
      %cst_20 = arith.constant 0.000000e+00 : f32
      %25 = vector.broadcast %cst_20 : f32 to vector<16x512xf32>
      %26 = arith.maximumf %24, %25 : vector<16x512xf32>
      %27 = arith.truncf %26 : vector<16x512xf32> to vector<16x512xbf16>
      %c0_21 = arith.constant 0 : index
      %c0_22 = arith.constant 0 : index
      %28 = vector.load %arg7[%c0_21, %c0_22] : memref<512x128xbf16, #tpu.memory_space<vmem>>, vector<512x128xbf16>
      %cst_23 = arith.constant dense<0.000000e+00> : vector<16x128xf32>
      %29 = tpu.matmul %27, %28, %cst_23 {dimension_numbers = #tpu.dot_dimension_numbers<[1], [0], [0], [1], [0, 0, 1, 1], [], []>} : vector<16x512xbf16>, vector<512x128xbf16>, vector<16x128xf32> -> vector<16x128xf32>
      %c0_24 = arith.constant 0 : index
      %c0_25 = arith.constant 0 : index
      %30 = vector.load %arg8[%c0_24, %c0_25] : memref<1x128xf32, #tpu.memory_space<vmem>>, vector<1x128xf32>
      %31 = vector.broadcast %30 : vector<1x128xf32> to vector<16x128xf32>
      %32 = arith.addf %29, %31 : vector<16x128xf32>
      %c0_26 = arith.constant 0 : index
      %c0_27 = arith.constant 0 : index
      %33 = vector.load %arg9[%c0_26, %c0_27] : memref<16x128xf32, #tpu.memory_space<vmem>>, vector<16x128xf32>
      tpu.vector_store %arg9[%c0_26, %c0_27], %32 {strides = array<i32>} : memref<16x128xf32, #tpu.memory_space<vmem>>, vector<16x128xf32>,
    } else {
    }
    return
  }
  func.func @transform_0(%arg0: i32, %arg1: i32) -> (i32, i32, i32) {
    %c0_i32 = arith.constant 0 : i32
    %c0_i32_0 = arith.constant 0 : i32
    return %arg1, %arg0, %c0_i32 : i32, i32, i32
  }
  func.func @transform_1(%arg0: i32, %arg1: i32) -> (i32, i32) {
    %c0_i32 = arith.constant 0 : i32
    %c0_i32_0 = arith.constant 0 : i32
    %c0_i32_1 = arith.constant 0 : i32
    return %c0_i32, %c0_i32_0 : i32, i32
  }
  func.func @transform_2(%arg0: i32, %arg1: i32) -> (i32, i32) {
    %c0_i32 = arith.constant 0 : i32
    %c0_i32_0 = arith.constant 0 : i32
    %c0_i32_1 = arith.constant 0 : i32
    return %c0_i32, %c0_i32_0 : i32, i32
  }
  func.func @transform_3(%arg0: i32, %arg1: i32) -> (i32, i32, i32) {
    %c0_i32 = arith.constant 0 : i32
    %c0_i32_0 = arith.constant 0 : i32
    %c0_i32_1 = arith.constant 0 : i32
    return %arg1, %c0_i32, %c0_i32_0 : i32, i32, i32
  }
  func.func @transform_4(%arg0: i32, %arg1: i32) -> (i32, i32) {
    %c0_i32 = arith.constant 0 : i32
    %c0_i32_0 = arith.constant 0 : i32
    return %arg0, %c0_i32 : i32, i32
  }
  func.func @transform_5(%arg0: i32, %arg1: i32) -> (i32, i32) {
    %c0_i32 = arith.constant 0 : i32
    %c0_i32_0 = arith.constant 0 : i32
    %c0_i32_1 = arith.constant 0 : i32
    return %c0_i32, %c0_i32_0 : i32, i32
  }
  func.func @transform_6(%arg0: i32, %arg1: i32) -> (i32, i32) {
    %c0_i32 = arith.constant 0 : i32
    %c0_i32_0 = arith.constant 0 : i32
    %c0_i32_1 = arith.constant 0 : i32
    return %c0_i32, %c0_i32_0 : i32, i32
  }
  func.func @transform_7(%arg0: i32, %arg1: i32) -> (i32, i32) {
    %c0_i32 = arith.constant 0 : i32
    %c0_i32_0 = arith.constant 0 : i32
    return %arg0, %c0_i32 : i32, i32
  }
}

</mosaic_0001>

<bundles_post_ra>
// kernel: dqn_forward.3
= control target key start
LH: loop header
LB: loop body
LE: loop exit
PB: predicated region body
PF: predicated region fallthrough
CT: control target
= control target key end

     0   :  { %s836_s1 = inlined_call_operand.vmem [shape: bf16[256,128], index: 1, kind: input, shape index: {}]   ;;  %s837_s0 = inlined_call_operand.vmem [shape: bf16[128,256], index: 0, kind: input, shape index: {}]   ;;  %s838_s2 = inlined_call_operand.vmem [shape: f32[1,128], index: 2, kind: input, shape index: {}]   ;;  %s839_s3 = inlined_call_operand.vmem [shape: bf16[128,128], index: 3, kind: output, shape index: {}]  }
   0x1   :  { %v635_v0 = vld [vmem:[%s836_s1 + $0x40] sm:$0xff]   ;;  %v637_v2 = vld [vmem:[%s836_s1 + $0x48] sm:$0xff]   ;;  %v639_v4 = vld [vmem:[%s836_s1 + $0x50] sm:$0xff]  }
   0x2   :  { %v636_v1 = vld [vmem:[%s836_s1] sm:$0xff]   ;;  %555 = vmatprep.subr.bf16.mxu0 %v635_v0  ;;  %619 = vmatprep.subr.bf16.mxu1 %v635_v0  ;;  %v638_v3 = vld [vmem:[%s836_s1 + $0x8] sm:$0xff]   ;;  %v640_v5 = vld [vmem:[%s836_s1 + $0x10] sm:$0xff]  }
   0x3   :  { %556 = vmatpush3.bf16.msra.mxu0 %v636_v1  ;;  %627 = vmatpush3.bf16.msra.mxu1 %v636_v1  ;;  %v641_v6 = vld [vmem:[%s836_s1 + $0x58] sm:$0xff]   ;;  %v643_v8 = vld [vmem:[%s836_s1 + $0x60] sm:$0xff]   ;;  %v645_v10 = vld [vmem:[%s836_s1 + $0x68] sm:$0xff]  }
   0x4   :  { %557 = vmatprep.subr.bf16.mxu0 %v637_v2  ;;  %620 = vmatprep.subr.bf16.mxu1 %v637_v2  ;;  %v642_v7 = vld [vmem:[%s836_s1 + $0x18] sm:$0xff]   ;;  %v644_v9 = vld [vmem:[%s836_s1 + $0x20] sm:$0xff]   ;;  %v646_v13 = vld [vmem:[%s836_s1 + $0x28] sm:$0xff]  }
   0x5   :  { %v653_v11 = vld [vmem:[%s837_s0 + $0x4] ss:$8 sps:$4 sm:$0xff]   ;;  %v647_v14 = vld [vmem:[%s836_s1 + $0x70] sm:$0xff]   ;;  %v649_v16 = vld [vmem:[%s836_s1 + $0x78] sm:$0xff]  }
   0x6   :  { %v656_v12 = vld [vmem:[%s837_s0 + $0x44] ss:$8 sps:$4 sm:$0xff]   ;;  %278 = vmatprep.mubr.bf16.mxu0 %v653_v11  ;;  %v648_v15 = vld [vmem:[%s836_s1 + $0x30] sm:$0xff]   ;;  %v650_v17 = vld [vmem:[%s836_s1 + $0x38] sm:$0xff]  }
   0x7   :  { %558 = vmatpush3.bf16.msra.mxu0 %v638_v3  ;;  %628 = vmatpush3.bf16.msra.mxu1 %v638_v3  ;;  %v651_v18 = vld [vmem:[%s837_s0] ss:$8 sps:$4 sm:$0xff]   ;;  %v657_v20 = vld [vmem:[%s837_s0 + $0x14] ss:$8 sps:$4 sm:$0xff]   ;;  %v661_v22 = vld [vmem:[%s837_s0 + $0x10] ss:$8 sps:$4 sm:$0xff]  }
   0x8   :  { %559 = vmatprep.subr.bf16.mxu0 %v639_v4  ;;  %621 = vmatprep.subr.bf16.mxu1 %v639_v4  ;;  %v654_v19 = vld [vmem:[%s837_s0 + $0x40] ss:$8 sps:$4 sm:$0xff]   ;;  %v659_v21 = vld [vmem:[%s837_s0 + $0x54] ss:$8 sps:$4 sm:$0xff]   ;;  %v662_v23 = vld [vmem:[%s837_s0 + $0x50] ss:$8 sps:$4 sm:$0xff]  }
   0x9   :  { %310 = vmatprep.mubr.bf16.mxu1 %v656_v12  ;;  %v663_v24 = vld [vmem:[%s837_s0 + $0x24] ss:$8 sps:$4 sm:$0xff]   ;;  %v667_v26 = vld [vmem:[%s837_s0 + $0x20] ss:$8 sps:$4 sm:$0xff]   ;;  %v669_v28 = vld [vmem:[%s837_s0 + $0x34] ss:$8 sps:$4 sm:$0xff]  }
   0xa   :  { %v665_v25 = vld [vmem:[%s837_s0 + $0x64] ss:$8 sps:$4 sm:$0xff]   ;;  %v668_v27 = vld [vmem:[%s837_s0 + $0x60] ss:$8 sps:$4 sm:$0xff]   ;;  %v671_v29 = vld [vmem:[%s837_s0 + $0x74] ss:$8 sps:$4 sm:$0xff]  }
   0xb   :  { %560 = vmatpush3.bf16.msra.mxu0 %v640_v5  ;;  %629 = vmatpush3.bf16.msra.mxu1 %v640_v5  ;;  %v673_v30 = vld [vmem:[%s837_s0 + $0x30] ss:$8 sps:$4 sm:$0xff]   ;;  %v794_v34 = vld [vmem:[%s838_s2] ss:$0 sm:$0xff] }
   0xc   :  { %561 = vmatprep.subr.bf16.mxu0 %v641_v6  ;;  %622 = vmatprep.subr.bf16.mxu1 %v641_v6  ;;  %v674_v31 = vld [vmem:[%s837_s0 + $0x70] ss:$8 sps:$4 sm:$0xff]  }
   0xf   :  { %562 = vmatpush3.bf16.msra.mxu0 %v642_v7  ;;  %630 = vmatpush3.bf16.msra.mxu1 %v642_v7 }
  0x10   :  { %563 = vmatprep.subr.bf16.mxu0 %v643_v8  ;;  %623 = vmatprep.subr.bf16.mxu1 %v643_v8 }
  0x13   :  { %564 = vmatpush3.bf16.msra.mxu0 %v644_v9  ;;  %631 = vmatpush3.bf16.msra.mxu1 %v644_v9 }
  0x14   :  { %565 = vmatprep.subr.bf16.mxu0 %v645_v10  ;;  %624 = vmatprep.subr.bf16.mxu1 %v645_v10 }
  0x17   :  { %566 = vmatpush3.bf16.msra.mxu0 %v646_v13  ;;  %632 = vmatpush3.bf16.msra.mxu1 %v646_v13 }
  0x18   :  { %567 = vmatprep.subr.bf16.mxu0 %v647_v14  ;;  %625 = vmatprep.subr.bf16.mxu1 %v647_v14 }
  0x1b   :  { %568 = vmatpush3.bf16.msra.mxu0 %v648_v15  ;;  %633 = vmatpush3.bf16.msra.mxu1 %v648_v15 }
  0x1c   :  { %569 = vmatprep.subr.bf16.mxu0 %v649_v16  ;;  %626 = vmatprep.subr.bf16.mxu1 %v649_v16 }
  0x1f   :  { %570 = vmatpush3.bf16.msra.mxu0 %v650_v17  ;;  %634 = vmatpush3.bf16.msra.mxu1 %v650_v17 }
  0x22   :  { %279 = vmatmul.mubr.bf16.vlgmr.msra.gmra.mrb[0].mxu0 %v651_v18  ;;  %311 = vmatmul.mubr.bf16.vlgmr.msra.gmra.mrb[0].mxu1 %v654_v19 }
  0x23   :  { %286 = vmatprep.mubr.bf16.mxu0 %v657_v20  ;;  %318 = vmatprep.mubr.bf16.mxu1 %v659_v21 }
  0x2a   :  { %287 = vmatmul.mubr.bf16.gmra.mrb[4].mxu0 %v661_v22  ;;  %319 = vmatmul.mubr.bf16.gmra.mrb[4].mxu1 %v662_v23 }
  0x2b   :  { %294 = vmatprep.mubr.bf16.mxu0 %v663_v24  ;;  %326 = vmatprep.mubr.bf16.mxu1 %v665_v25 }
  0x32   :  { %295 = vmatmul.mubr.bf16.gmra.mrb[8].mxu0 %v667_v26  ;;  %327 = vmatmul.mubr.bf16.gmra.mrb[8].mxu1 %v668_v27 }
  0x33   :  { %302 = vmatprep.mubr.bf16.mxu0 %v669_v28  ;;  %334 = vmatprep.mubr.bf16.mxu1 %v671_v29 }
  0x3a   :  { %303 = vmatmul.mubr.bf16.gmra.mrb[12].mxu0 %v673_v30  ;;  %335 = vmatmul.mubr.bf16.gmra.mrb[12].mxu1 %v674_v31 }
  0xf5   :  { %v571_v32 = vpop.f32.mrb[0].mxu0  ;;  %v595_v33 = vpop.f32.mrb[0].mxu1 }
  0xf6   :  { %v572_v35 = vpop.f32.mrb[1].mxu0  ;;  %v596_v36 = vpop.f32.mrb[1].mxu1 }
  0xf7   :  { %v573_v37 = vadd.f32 %v572_v35, %v571_v32  ;;  %v597_v38 = vadd.f32 %v596_v36, %v595_v33  ;;  %v574_v39 = vpop.f32.mrb[2].mxu0  ;;  %v598_v40 = vpop.f32.mrb[2].mxu1 }
  0xf8   :  { %v575_v41 = vpop.f32.mrb[3].mxu0  ;;  %v599_v42 = vpop.f32.mrb[3].mxu1 }
  0xf9   :  { %v281_v43 = vadd.f32 %v573_v37, %v794_v34  ;;  %v313_v44 = vadd.f32 %v597_v38, %v794_v34  ;;  %v576_v45 = vadd.f32 %v575_v41, %v574_v39  ;;  %v600_v46 = vadd.f32 %v599_v42, %v598_v40 }
  0xfb   :  { %v284_v47 = vadd.f32 %v576_v45, %v794_v34  ;;  %v316_v48 = vadd.f32 %v600_v46, %v794_v34  ;;  %v343_v49 = vmax.f32 %v281_v43, 0.0  ;;  %v351_v50 = vmax.f32 %v313_v44, 0.0 }
  0xfd   :  { %v344_v51 = vmax.f32 %v284_v47, 0.0  ;;  %v352_v52 = vmax.f32 %v316_v48, 0.0  ;;  %v577_v53 = vpop.f32.mrb[4].mxu0  ;;  %v601_v54 = vpop.f32.mrb[4].mxu1 }
  0xfe   :  { %v578_v55 = vpop.f32.mrb[5].mxu0  ;;  %v602_v56 = vpop.f32.mrb[5].mxu1 }
  0xff   :  { %v511_v57 = vpack.c.bf16 %v344_v51, %v343_v49  ;;  %v531_v58 = vpack.c.bf16 %v352_v52, %v351_v50  ;;  %v579_v59 = vadd.f32 %v578_v55, %v577_v53  ;;  %v603_v60 = vadd.f32 %v602_v56, %v601_v54  ;;  %v580_v61 = vpop.f32.mrb[6].mxu0  ;;  %v604_v62 = vpop.f32.mrb[6].mxu1 }
 0x100   :  { %v581_v63 = vpop.f32.mrb[7].mxu0  ;;  %v605_v0 = vpop.f32.mrb[7].mxu1 }
 0x101   :  { %512 = vst [vmem:[%s839_s3] sm:$0xff] %v511_v57   ;;  %551 = vst [vmem:[%s839_s3 + $0x20] sm:$0xff] %v531_v58   ;;  %v289_v1 = vadd.f32 %v579_v59, %v794_v34  ;;  %v321_v2 = vadd.f32 %v603_v60, %v794_v34  ;;  %v582_v3 = vadd.f32 %v581_v63, %v580_v61 }
 0x102   :  { %v606_v4 = vadd.f32 %v605_v0, %v604_v62 }
 0x103   :  { %v292_v5 = vadd.f32 %v582_v3, %v794_v34  ;;  %v345_v7 = vmax.f32 %v289_v1, 0.0  ;;  %v353_v8 = vmax.f32 %v321_v2, 0.0 }
 0x104   :  { %v324_v6 = vadd.f32 %v606_v4, %v794_v34 }
 0x105   :  { %v346_v9 = vmax.f32 %v292_v5, 0.0  ;;  %v583_v11 = vpop.f32.mrb[8].mxu0  ;;  %v607_v12 = vpop.f32.mrb[8].mxu1 }
 0x106   :  { %v354_v10 = vmax.f32 %v324_v6, 0.0  ;;  %v584_v13 = vpop.f32.mrb[9].mxu0  ;;  %v608_v14 = vpop.f32.mrb[9].mxu1 }
 0x107   :  { %v516_v15 = vpack.c.bf16 %v346_v9, %v345_v7  ;;  %v585_v17 = vadd.f32 %v584_v13, %v583_v11  ;;  %v609_v18 = vadd.f32 %v608_v14, %v607_v12  ;;  %v586_v19 = vpop.f32.mrb[10].mxu0  ;;  %v610_v20 = vpop.f32.mrb[10].mxu1 }
 0x108   :  { %v536_v16 = vpack.c.bf16 %v354_v10, %v353_v8  ;;  %v587_v21 = vpop.f32.mrb[11].mxu0  ;;  %v611_v22 = vpop.f32.mrb[11].mxu1 }
 0x109   :  { %548 = vst [vmem:[%s839_s3 + $0x8] sm:$0xff] %v516_v15   ;;  %v297_v23 = vadd.f32 %v585_v17, %v794_v34  ;;  %v329_v24 = vadd.f32 %v609_v18, %v794_v34  ;;  %v588_v25 = vadd.f32 %v587_v21, %v586_v19  ;;  %v612_v26 = vadd.f32 %v611_v22, %v610_v20 }
 0x10a   :  { %552 = vst [vmem:[%s839_s3 + $0x28] sm:$0xff] %v536_v16  }
 0x10b   :  { %v300_v27 = vadd.f32 %v588_v25, %v794_v34  ;;  %v332_v28 = vadd.f32 %v612_v26, %v794_v34  ;;  %v347_v29 = vmax.f32 %v297_v23, 0.0  ;;  %v355_v30 = vmax.f32 %v329_v24, 0.0 }
 0x10d   :  { %v348_v31 = vmax.f32 %v300_v27, 0.0  ;;  %v356_v32 = vmax.f32 %v332_v28, 0.0  ;;  %v589_v33 = vpop.f32.mrb[12].mxu0  ;;  %v613_v35 = vpop.f32.mrb[12].mxu1 }
 0x10e   :  { %v590_v36 = vpop.f32.mrb[13].mxu0  ;;  %v614_v37 = vpop.f32.mrb[13].mxu1 }
 0x10f   :  { %v521_v38 = vpack.c.bf16 %v348_v31, %v347_v29  ;;  %v541_v39 = vpack.c.bf16 %v356_v32, %v355_v30  ;;  %v591_v40 = vadd.f32 %v590_v36, %v589_v33  ;;  %v615_v41 = vadd.f32 %v614_v37, %v613_v35  ;;  %v592_v42 = vpop.f32.mrb[14].mxu0  ;;  %v616_v43 = vpop.f32.mrb[14].mxu1 }
 0x110   :  { %v593_v44 = vpop.f32.mrb[15].mxu0  ;;  %v617_v45 = vpop.f32.mrb[15].mxu1 }
 0x111   :  { %549 = vst [vmem:[%s839_s3 + $0x10] sm:$0xff] %v521_v38   ;;  %553 = vst [vmem:[%s839_s3 + $0x30] sm:$0xff] %v541_v39   ;;  %v305_v46 = vadd.f32 %v591_v40, %v794_v34  ;;  %v337_v47 = vadd.f32 %v615_v41, %v794_v34  ;;  %v594_v48 = vadd.f32 %v593_v44, %v592_v42 }
 0x112   :  { %v618_v49 = vadd.f32 %v617_v45, %v616_v43 }
 0x113   :  { %v308_v50 = vadd.f32 %v594_v48, %v794_v34  ;;  %v349_v52 = vmax.f32 %v305_v46, 0.0  ;;  %v357_v53 = vmax.f32 %v337_v47, 0.0 }
 0x114   :  { %v340_v51 = vadd.f32 %v618_v49, %v794_v34 }
 0x115   :  { %v350_v54 = vmax.f32 %v308_v50, 0.0 }
 0x116   :  { %v358_v55 = vmax.f32 %v340_v51, 0.0 }
 0x117   :  { %v526_v56 = vpack.c.bf16 %v350_v54, %v349_v52 }
 0x118   :  { %v546_v57 = vpack.c.bf16 %v358_v55, %v357_v53 }
 0x119   :  { %550 = vst [vmem:[%s839_s3 + $0x18] sm:$0xff] %v526_v56  }
 0x11a   :  { %554 = vst [vmem:[%s839_s3 + $0x38] sm:$0xff] %v546_v57  }

// kernel: dqn_forward.4
= control target key start
LH: loop header
LB: loop body
LE: loop exit
PB: predicated region body
PF: predicated region fallthrough
CT: control target
= control target key end

     0   :  { %s761_s1 = inlined_call_operand.vmem [shape: bf16[512,128], index: 1, kind: input, shape index: {}]   ;;  %s762_s0 = inlined_call_operand.vmem [shape: bf16[32,512], index: 0, kind: input, shape index: {}]   ;;  %s763_s2 = inlined_call_operand.vmem [shape: f32[1,128], index: 2, kind: input, shape index: {}]   ;;  %s764_s3 = inlined_call_operand.vmem [shape: bf16[32,128], index: 3, kind: output, shape index: {}]  }
   0x1   :  { %v568_v0 = vld [vmem:[%s761_s1 + $0x40] sm:$0xff]   ;;  %v572_v4 = vld [vmem:[%s761_s1 + $0x48] sm:$0xff]   ;;  %v576_v8 = vld [vmem:[%s761_s1 + $0x50] sm:$0xff]  }
   0x2   :  { %v569_v1 = vld [vmem:[%s761_s1 + $0xc0] sm:$0xff]   ;;  %512 = vmatprep.subr.bf16.mxu0 %v568_v0  ;;  %v573_v5 = vld [vmem:[%s761_s1 + $0xc8] sm:$0xff]   ;;  %v577_v9 = vld [vmem:[%s761_s1 + $0xd0] sm:$0xff]  }
   0x3   :  { %v570_v2 = vld [vmem:[%s761_s1] sm:$0xff]   ;;  %540 = vmatprep.subr.bf16.mxu1 %v569_v1  ;;  %v574_v6 = vld [vmem:[%s761_s1 + $0x8] sm:$0xff]   ;;  %v578_v10 = vld [vmem:[%s761_s1 + $0x10] sm:$0xff]  }
   0x4   :  { %v571_v3 = vld [vmem:[%s761_s1 + $0x80] sm:$0xff]   ;;  %513 = vmatpush3.bf16.msra.mxu0 %v570_v2  ;;  %v575_v7 = vld [vmem:[%s761_s1 + $0x88] sm:$0xff]   ;;  %v579_v11 = vld [vmem:[%s761_s1 + $0x90] sm:$0xff]  }
   0x5   :  { %541 = vmatpush3.bf16.msra.mxu1 %v571_v3  ;;  %514 = vmatprep.subr.bf16.mxu0 %v572_v4  ;;  %v580_v12 = vld [vmem:[%s761_s1 + $0x58] sm:$0xff]   ;;  %v584_v16 = vld [vmem:[%s761_s1 + $0x60] sm:$0xff]   ;;  %v588_v20 = vld [vmem:[%s761_s1 + $0x68] sm:$0xff]  }
   0x6   :  { %542 = vmatprep.subr.bf16.mxu1 %v573_v5  ;;  %v581_v13 = vld [vmem:[%s761_s1 + $0xd8] sm:$0xff]   ;;  %v585_v17 = vld [vmem:[%s761_s1 + $0xe0] sm:$0xff]   ;;  %v589_v21 = vld [vmem:[%s761_s1 + $0xe8] sm:$0xff]  }
   0x7   :  { %v582_v14 = vld [vmem:[%s761_s1 + $0x18] sm:$0xff]   ;;  %v586_v18 = vld [vmem:[%s761_s1 + $0x20] sm:$0xff]   ;;  %v590_v22 = vld [vmem:[%s761_s1 + $0x28] sm:$0xff]  }
   0x8   :  { %515 = vmatpush3.bf16.msra.mxu0 %v574_v6  ;;  %v583_v15 = vld [vmem:[%s761_s1 + $0x98] sm:$0xff]   ;;  %v587_v19 = vld [vmem:[%s761_s1 + $0xa0] sm:$0xff]   ;;  %v591_v23 = vld [vmem:[%s761_s1 + $0xa8] sm:$0xff]  }
   0x9   :  { %543 = vmatpush3.bf16.msra.mxu1 %v575_v7  ;;  %516 = vmatprep.subr.bf16.mxu0 %v576_v8  ;;  %v592_v24 = vld [vmem:[%s761_s1 + $0x70] sm:$0xff]   ;;  %v596_v28 = vld [vmem:[%s761_s1 + $0x78] sm:$0xff]   ;;  %v452_v42 = vld [vmem:[%s763_s2] ss:$0 sm:$0xff] }
   0xa   :  { %544 = vmatprep.subr.bf16.mxu1 %v577_v9  ;;  %v593_v25 = vld [vmem:[%s761_s1 + $0xf0] sm:$0xff]   ;;  %v597_v29 = vld [vmem:[%s761_s1 + $0xf8] sm:$0xff]  }
   0xb   :  { %v594_v26 = vld [vmem:[%s761_s1 + $0x30] sm:$0xff]   ;;  %v598_v30 = vld [vmem:[%s761_s1 + $0x38] sm:$0xff]  }
   0xc   :  { %517 = vmatpush3.bf16.msra.mxu0 %v578_v10  ;;  %v595_v27 = vld [vmem:[%s761_s1 + $0xb0] sm:$0xff]   ;;  %v599_v31 = vld [vmem:[%s761_s1 + $0xb8] sm:$0xff]  }
   0xd   :  { %545 = vmatpush3.bf16.msra.mxu1 %v579_v11  ;;  %518 = vmatprep.subr.bf16.mxu0 %v580_v12  ;;  %v600_v32 = vld [vmem:[%s762_s0] ss:$16 sps:$4 sm:$0xff]   ;;  %v602_v33 = vld [vmem:[%s762_s0 + $0x4] ss:$16 sps:$4 sm:$0xff]   ;;  %v603_v34 = vld [vmem:[%s762_s0 + $0x8] ss:$16 sps:$4 sm:$0xff]  }
   0xe   :  { %546 = vmatprep.subr.bf16.mxu1 %v581_v13  ;;  %v605_v35 = vld [vmem:[%s762_s0 + $0xc] ss:$16 sps:$4 sm:$0xff]   ;;  %358 = vmatprep.mubr.bf16.mxu0 %v602_v33  ;;  %v606_v36 = vld [vmem:[%s762_s0 + $0x24] ss:$16 sps:$4 sm:$0xff]   ;;  %v610_v38 = vld [vmem:[%s762_s0 + $0x20] ss:$16 sps:$4 sm:$0xff]  }
   0xf   :  { %407 = vmatprep.mubr.bf16.mxu1 %v605_v35  ;;  %v608_v37 = vld [vmem:[%s762_s0 + $0x2c] ss:$16 sps:$4 sm:$0xff]   ;;  %v611_v39 = vld [vmem:[%s762_s0 + $0x28] ss:$16 sps:$4 sm:$0xff]  }
  0x10   :  { %519 = vmatpush3.bf16.msra.mxu0 %v582_v14 }
  0x11   :  { %547 = vmatpush3.bf16.msra.mxu1 %v583_v15  ;;  %520 = vmatprep.subr.bf16.mxu0 %v584_v16 }
  0x12   :  { %548 = vmatprep.subr.bf16.mxu1 %v585_v17 }
  0x14   :  { %521 = vmatpush3.bf16.msra.mxu0 %v586_v18 }
  0x15   :  { %549 = vmatpush3.bf16.msra.mxu1 %v587_v19  ;;  %522 = vmatprep.subr.bf16.mxu0 %v588_v20 }
  0x16   :  { %550 = vmatprep.subr.bf16.mxu1 %v589_v21 }
  0x18   :  { %523 = vmatpush3.bf16.msra.mxu0 %v590_v22 }
  0x19   :  { %551 = vmatpush3.bf16.msra.mxu1 %v591_v23  ;;  %524 = vmatprep.subr.bf16.mxu0 %v592_v24 }
  0x1a   :  { %552 = vmatprep.subr.bf16.mxu1 %v593_v25 }
  0x1c   :  { %525 = vmatpush3.bf16.msra.mxu0 %v594_v26 }
  0x1d   :  { %553 = vmatpush3.bf16.msra.mxu1 %v595_v27  ;;  %526 = vmatprep.subr.bf16.mxu0 %v596_v28 }
  0x1e   :  { %554 = vmatprep.subr.bf16.mxu1 %v597_v29 }
  0x20   :  { %527 = vmatpush3.bf16.msra.mxu0 %v598_v30 }
  0x21   :  { %555 = vmatpush3.bf16.msra.mxu1 %v599_v31 }
  0x23   :  { %359 = vmatmul.mubr.bf16.vlgmr.msra.gmra.mrb[0].mxu0 %v600_v32 }
  0x24   :  { %408 = vmatmul.mubr.bf16.vlgmr.msra.gmra.mrb[0].mxu1 %v603_v34  ;;  %366 = vmatprep.mubr.bf16.mxu0 %v606_v36 }
  0x25   :  { %415 = vmatprep.mubr.bf16.mxu1 %v608_v37 }
  0x2b   :  { %367 = vmatmul.mubr.bf16.gmra.mrb[4].mxu0 %v610_v38 }
  0x2c   :  { %416 = vmatmul.mubr.bf16.gmra.mrb[4].mxu1 %v611_v39 }
  0xf6   :  { %v528_v40 = vpop.f32.mrb[0].mxu0 }
  0xf7   :  { %v556_v41 = vpop.f32.mrb[0].mxu1  ;;  %v529_v43 = vpop.f32.mrb[1].mxu0 }
  0xf8   :  { %v530_v44 = vadd.f32 %v529_v43, %v528_v40  ;;  %v557_v45 = vpop.f32.mrb[1].mxu1  ;;  %v531_v46 = vpop.f32.mrb[2].mxu0 }
  0xf9   :  { %v558_v47 = vadd.f32 %v557_v45, %v556_v41  ;;  %v559_v48 = vpop.f32.mrb[2].mxu1  ;;  %v532_v49 = vpop.f32.mrb[3].mxu0 }
  0xfa   :  { %v361_v50 = vadd.f32 %v530_v44, %v452_v42  ;;  %v533_v51 = vadd.f32 %v532_v49, %v531_v46  ;;  %v560_v52 = vpop.f32.mrb[3].mxu1 }
  0xfb   :  { %v561_v53 = vadd.f32 %v560_v52, %v559_v48 }
  0xfc   :  { %v410_v54 = vadd.f32 %v558_v47, %v361_v50  ;;  %v364_v55 = vadd.f32 %v533_v51, %v452_v42 }
  0xfe   :  { %v413_v56 = vadd.f32 %v561_v53, %v364_v55  ;;  %v534_v57 = vpop.f32.mrb[4].mxu0  ;;  %v424_v60 = vmax.f32 %v410_v54, 0.0 }
  0xff   :  { %v562_v58 = vpop.f32.mrb[4].mxu1  ;;  %v535_v59 = vpop.f32.mrb[5].mxu0 }
 0x100   :  { %v425_v61 = vmax.f32 %v413_v56, 0.0  ;;  %v536_v62 = vadd.f32 %v535_v59, %v534_v57  ;;  %v563_v63 = vpop.f32.mrb[5].mxu1  ;;  %v537_v0 = vpop.f32.mrb[6].mxu0 }
 0x101   :  { %v564_v1 = vadd.f32 %v563_v63, %v562_v58  ;;  %v565_v2 = vpop.f32.mrb[6].mxu1  ;;  %v538_v3 = vpop.f32.mrb[7].mxu0 }
 0x102   :  { %v504_v4 = vpack.c.bf16 %v425_v61, %v424_v60  ;;  %v369_v5 = vadd.f32 %v536_v62, %v452_v42  ;;  %v539_v6 = vadd.f32 %v538_v3, %v537_v0  ;;  %v566_v7 = vpop.f32.mrb[7].mxu1 }
 0x103   :  { %v567_v8 = vadd.f32 %v566_v7, %v565_v2 }
 0x104   :  { %505 = vst [vmem:[%s764_s3] sm:$0xff] %v504_v4   ;;  %v418_v9 = vadd.f32 %v564_v1, %v369_v5  ;;  %v372_v10 = vadd.f32 %v539_v6, %v452_v42 }
 0x106   :  { %v421_v11 = vadd.f32 %v567_v8, %v372_v10  ;;  %v426_v12 = vmax.f32 %v418_v9, 0.0 }
 0x108   :  { %v427_v13 = vmax.f32 %v421_v11, 0.0 }
 0x10a   :  { %v509_v14 = vpack.c.bf16 %v427_v13, %v426_v12 }
 0x10c   :  { %511 = vst [vmem:[%s764_s3 + $0x8] sm:$0xff] %v509_v14  }

// kernel: dqn_forward.5
= control target key start
LH: loop header
LB: loop body
LE: loop exit
PB: predicated region body
PF: predicated region fallthrough
CT: control target
= control target key end

     0   :  { %v1448_v33 = vmov 0.0   ;;  %vm1449_vm0 = vmmov 0   ;;  %v1450_v55 = vmov 0   ;;  %vm608_vm1 = vcmask 523264   ;;  %s1808_s1 = inlined_call_operand.vmem [shape: bf16[640,64], index: 1, kind: input, shape index: {}]   ;;  %s1809_s0 = inlined_call_operand.vmem [shape: bf16[1,16,640], index: 0, kind: input, shape index: {}]   ;;  %s1810_s3 = inlined_call_operand.vmem [shape: bf16[1,64,512], index: 3, kind: input, shape index: {}]   ;;  %s1811_s5 = inlined_call_operand.vmem [shape: bf16[512,128], index: 5, kind: input, shape index: {}]   ;;  %s1812_s2 = inlined_call_operand.vmem [shape: f32[1,64], index: 2, kind: input, shape index: {}]   ;;  %s1813_s4 = inlined_call_operand.vmem [shape: f32[16,512], index: 4, kind: input, shape index: {}]   ;;  %s1814_s6 = inlined_call_operand.vmem [shape: f32[1,128], index: 6, kind: input, shape index: {}]   ;;  %s1815_s7 = inlined_call_operand.vmem [shape: f32[16,128], index: 7, kind: output, shape index: {}]  }
   0x1   :  { %v1345_v0 = vld [vmem:[%s1808_s1 + $0x40] sm:$0xff]   ;;  %v1349_v4 = vld [vmem:[%s1808_s1 + $0x48] sm:$0xff]   ;;  %v1353_v8 = vld [vmem:[%s1808_s1 + $0x50] sm:$0xff]  }
   0x2   :  { %v1346_v1 = vld [vmem:[%s1808_s1] sm:$0xff]   ;;  %1225 = vmatprep.subr.bf16.mxu0 %v1345_v0  ;;  %v1350_v5 = vld [vmem:[%s1808_s1 + $0x8] sm:$0xff]   ;;  %v1354_v9 = vld [vmem:[%s1808_s1 + $0x10] sm:$0xff]  }
   0x3   :  { %v1347_v2 = vld [vmem:[%s1808_s1 + $0xc0] sm:$0xff]   ;;  %1226 = vmatpush3.bf16.msra.mxu0 %v1346_v1  ;;  %v1351_v6 = vld [vmem:[%s1808_s1 + $0xc8] sm:$0xff]   ;;  %v1355_v10 = vld [vmem:[%s1808_s1 + $0xd0] sm:$0xff]  }
   0x4   :  { %v1348_v3 = vld [vmem:[%s1808_s1 + $0x80] sm:$0xff]   ;;  %1247 = vmatprep.subr.bf16.mxu1 %v1347_v2  ;;  %1227 = vmatprep.subr.bf16.mxu0 %v1349_v4  ;;  %v1352_v7 = vld [vmem:[%s1808_s1 + $0x88] sm:$0xff]   ;;  %v1356_v11 = vld [vmem:[%s1808_s1 + $0x90] sm:$0xff]  }
   0x5   :  { %1248 = vmatpush3.bf16.msra.mxu1 %v1348_v3  ;;  %v1357_v12 = vld [vmem:[%s1808_s1 + $0x58] sm:$0xff]   ;;  %v1361_v16 = vld [vmem:[%s1808_s1 + $0x60] sm:$0xff]   ;;  %v1365_v20 = vld [vmem:[%s1808_s1 + $0x68] sm:$0xff]  }
   0x6   :  { %1249 = vmatprep.subr.bf16.mxu1 %v1351_v6  ;;  %v1358_v13 = vld [vmem:[%s1808_s1 + $0x18] sm:$0xff]   ;;  %v1362_v17 = vld [vmem:[%s1808_s1 + $0x20] sm:$0xff]   ;;  %v1366_v21 = vld [vmem:[%s1808_s1 + $0x28] sm:$0xff]  }
   0x7   :  { %1228 = vmatpush3.bf16.msra.mxu0 %v1350_v5  ;;  %v1359_v14 = vld [vmem:[%s1808_s1 + $0xd8] sm:$0xff]   ;;  %v1363_v18 = vld [vmem:[%s1808_s1 + $0xe0] sm:$0xff]   ;;  %v1367_v22 = vld [vmem:[%s1808_s1 + $0xe8] sm:$0xff]  }
   0x8   :  { %1229 = vmatprep.subr.bf16.mxu0 %v1353_v8  ;;  %v1360_v15 = vld [vmem:[%s1808_s1 + $0x98] sm:$0xff]   ;;  %v1364_v19 = vld [vmem:[%s1808_s1 + $0xa0] sm:$0xff]   ;;  %v1368_v23 = vld [vmem:[%s1808_s1 + $0xa8] sm:$0xff]  }
   0x9   :  { %1250 = vmatpush3.bf16.msra.mxu1 %v1352_v7  ;;  %v1369_v24 = vld [vmem:[%s1808_s1 + $0x70] sm:$0xff]   ;;  %v1373_v28 = vld [vmem:[%s1808_s1 + $0x78] sm:$0xff]   ;;  %v1382_v36 = vld [vmem:[%s1809_s0 + $0xc] ss:$20 sps:$4 sm:$0xff]  }
   0xa   :  { %1251 = vmatprep.subr.bf16.mxu1 %v1355_v10  ;;  %v1370_v25 = vld [vmem:[%s1808_s1 + $0x30] sm:$0xff]   ;;  %v1374_v29 = vld [vmem:[%s1808_s1 + $0x38] sm:$0xff]   ;;  %v1383_v37 = vld [vmem:[%s1808_s1 + $0x100] sm:$0xff]   ;;  %459 = vmatprep.mubr.bf16.mxu1 %v1382_v36 }
   0xb   :  { %1230 = vmatpush3.bf16.msra.mxu0 %v1354_v9  ;;  %v1371_v26 = vld [vmem:[%s1808_s1 + $0xf0] sm:$0xff]   ;;  %v1375_v30 = vld [vmem:[%s1808_s1 + $0xf8] sm:$0xff]   ;;  %v1384_v38 = vld [vmem:[%s1808_s1 + $0x108] sm:$0xff]  }
   0xc   :  { %1231 = vmatprep.subr.bf16.mxu0 %v1357_v12  ;;  %v1372_v27 = vld [vmem:[%s1808_s1 + $0xb0] sm:$0xff]   ;;  %v1378_v32 = vld [vmem:[%s1809_s0 + $0x4] ss:$20 sps:$4 sm:$0xff]   ;;  %v1380_v35 = vld [vmem:[%s1809_s0 + $0x8] ss:$20 sps:$4 sm:$0xff]  }
   0xd   :  { %1252 = vmatpush3.bf16.msra.mxu1 %v1356_v11  ;;  %v1376_v31 = vld [vmem:[%s1809_s0] ss:$20 sps:$4 sm:$0xff]   ;;  %v1379_v34 = vld [vmem:[%s1808_s1 + $0xb8] sm:$0xff]   ;;  %418 = vmatprep.mubr.bf16.mxu0 %v1378_v32  ;;  %v1388_v42 = vld [vmem:[%s1808_s1 + $0x128] sm:$0xff]  }
   0xe   :  { %1253 = vmatprep.subr.bf16.mxu1 %v1359_v14  ;;  %v1385_v39 = vld [vmem:[%s1808_s1 + $0x110] sm:$0xff]   ;;  %v1386_v40 = vld [vmem:[%s1808_s1 + $0x118] sm:$0xff]   ;;  %v1387_v41 = vld [vmem:[%s1808_s1 + $0x120] sm:$0xff]  }
   0xf   :  { %1232 = vmatpush3.bf16.msra.mxu0 %v1358_v13  ;;  %v1389_v43 = vld [vmem:[%s1808_s1 + $0x130] sm:$0xff]   ;;  %v1390_v44 = vld [vmem:[%s1808_s1 + $0x138] sm:$0xff]   ;;  %v1416_v56 = vld [vmem:[%s1811_s5 + $0x40] sm:$0xff]  }
  0x10   :  { %1233 = vmatprep.subr.bf16.mxu0 %v1361_v16  ;;  %v1391_v45 = vld [vmem:[%s1809_s0 + $0x10] ss:$20 sps:$4 sm:$0xff]   ;;  %v1406_v54 = vld [vmem:[%s1810_s3 + $0xc] ss:$16 sps:$4 sm:$0xff]   ;;  %v1128_v4 = vld [vmem:[%s1812_s2] ss:$0 sm:$0xff] }
  0x11   :  { %1254 = vmatpush3.bf16.msra.mxu1 %v1360_v15  ;;  %v1392_v46 = vld [vmem:[%s1810_s3] ss:$16 sps:$4 sm:$0xff]   ;;  %v1394_v47 = vld [vmem:[%s1810_s3 + $0x4] ss:$16 sps:$4 sm:$0xff]   ;;  %v1418_v58 = vld [vmem:[%s1811_s5 + $0x48] sm:$0xff]  }
  0x12   :  { %1255 = vmatprep.subr.bf16.mxu1 %v1363_v18  ;;  %v1395_v48 = vld [vmem:[%s1810_s3 + $0x20] ss:$16 sps:$4 sm:$0xff]   ;;  %v1397_v49 = vld [vmem:[%s1810_s3 + $0x24] ss:$16 sps:$4 sm:$0xff]   ;;  %v1419_v59 = vld [vmem:[%s1811_s5 + $0x8] sm:$0xff]  }
  0x13   :  { %1234 = vmatpush3.bf16.msra.mxu0 %v1362_v17  ;;  %v1400_v50 = vld [vmem:[%s1810_s3 + $0x44] ss:$16 sps:$4 sm:$0xff]   ;;  %v1398_v51 = vld [vmem:[%s1810_s3 + $0x40] ss:$16 sps:$4 sm:$0xff]   ;;  %v1422_v62 = vld [vmem:[%s1811_s5 + $0x58] sm:$0xff]  }
  0x14   :  { %1235 = vmatprep.subr.bf16.mxu0 %v1365_v20  ;;  %v1403_v52 = vld [vmem:[%s1810_s3 + $0x64] ss:$16 sps:$4 sm:$0xff]   ;;  %v1401_v53 = vld [vmem:[%s1810_s3 + $0x60] ss:$16 sps:$4 sm:$0xff]   ;;  %v1423_v63 = vld [vmem:[%s1811_s5 + $0x18] sm:$0xff]  }
  0x15   :  { %1256 = vmatpush3.bf16.msra.mxu1 %v1364_v19  ;;  %v1417_v57 = vld [vmem:[%s1811_s5] sm:$0xff]   ;;  %v1420_v60 = vld [vmem:[%s1811_s5 + $0x50] sm:$0xff]   ;;  %v1429_v2 = vld [vmem:[%s1811_s5 + $0x68] sm:$0xff]  }
  0x16   :  { %1257 = vmatprep.subr.bf16.mxu1 %v1367_v22  ;;  %v1421_v61 = vld [vmem:[%s1811_s5 + $0x10] sm:$0xff]   ;;  %v1425_v0 = vld [vmem:[%s1811_s5 + $0x60] sm:$0xff]   ;;  %v1412_v32 = vld [vmem:[%s1810_s3 + $0x4c] ss:$16 sps:$4 sm:$0xff]  }
  0x17   :  { %1236 = vmatpush3.bf16.msra.mxu0 %v1366_v21  ;;  %v1427_v1 = vld [vmem:[%s1811_s5 + $0x20] sm:$0xff]  }
  0x18   :  { %1237 = vmatprep.subr.bf16.mxu0 %v1369_v24  ;;  %v1424_v36 = vld [vmem:[%s1811_s5 + $0xc0] sm:$0xff]  }
  0x19   :  { %1258 = vmatpush3.bf16.msra.mxu1 %v1368_v23 }
  0x1a   :  { %1259 = vmatprep.subr.bf16.mxu1 %v1371_v26 }
  0x1b   :  { %1238 = vmatpush3.bf16.msra.mxu0 %v1370_v25 }
  0x1c   :  { %1239 = vmatprep.subr.bf16.mxu0 %v1373_v28  ;;  %v1404_v28 = vld [vmem:[%s1810_s3 + $0x8] ss:$16 sps:$4 sm:$0xff]  }
  0x1d   :  { %1260 = vmatpush3.bf16.msra.mxu1 %v1372_v27 }
  0x1e   :  { %1261 = vmatprep.subr.bf16.mxu1 %v1375_v30  ;;  %v1409_v30 = vld [vmem:[%s1810_s3 + $0x2c] ss:$16 sps:$4 sm:$0xff]  }
  0x1f   :  { %1240 = vmatpush3.bf16.msra.mxu0 %v1374_v29 }
  0x20   :  { %1322 = vmatprep.subr.bf16.mxu0 %v1448_v33 }
  0x21   :  { %1262 = vmatpush3.bf16.msra.mxu1 %v1379_v34  ;;  %v1415_v34 = vld [vmem:[%s1810_s3 + $0x6c] ss:$16 sps:$4 sm:$0xff]  }
  0x22   :  { %419 = vmatmul.mubr.bf16.vlgmr.msra.gmra.mrb[0].mxu0 %v1376_v31  ;;  %612 = vmatprep.subr.bf16.mxu1 %v1394_v47  ;;  %v1407_v31 = vld [vmem:[%s1810_s3 + $0x28] ss:$16 sps:$4 sm:$0xff]  }
  0x23   :  { %1338 = vmatprep.mubr.msk.bf16.mxu0 %vm1449_vm0, %v1448_v33  ;;  %1323 = vmatpush3.bf16.msra.mxu0 %v1383_v37  ;;  %v1426_v37 = vld [vmem:[%s1811_s5 + $0x80] sm:$0xff]   ;;  %v1438_v47 = vld [vmem:[%s1811_s5 + $0x98] sm:$0xff]  }
  0x24   :  { %460 = vmatmul.mubr.bf16.vlgmr.msra.gmra.mrb[0].mxu1 %v1380_v35  ;;  %1324 = vmatprep.subr.bf16.mxu0 %v1448_v33  ;;  %v1413_v35 = vld [vmem:[%s1810_s3 + $0x68] ss:$16 sps:$4 sm:$0xff]  }
  0x25   :  { %613 = vmatpush1.bf16.msra.mxu1 %v1392_v46  ;;  %644 = vmatprep.mubr.bf16.mxu1 %v1450_v55  ;;  %v1437_v46 = vld [vmem:[%s1811_s5 + $0x78] sm:$0xff]  }
  0x26   :  { %614 = vmatprep.subr.bf16.mxu1 %v1397_v49  ;;  %v1440_v49 = vld [vmem:[%s1811_s5 + $0xe0] sm:$0xff]  }
  0x27   :  { %1325 = vmatpush3.bf16.msra.mxu0 %v1384_v38  ;;  %v1428_v38 = vld [vmem:[%s1811_s5 + $0xc8] sm:$0xff]  }
  0x28   :  { %1326 = vmatprep.subr.bf16.mxu0 %v1448_v33 }
  0x29   :  { %615 = vmatpush1.bf16.msra.mxu1 %v1395_v48  ;;  %v1439_v48 = vld [vmem:[%s1811_s5 + $0x38] sm:$0xff]  }
  0x2a   :  { %616 = vmatprep.subr.bf16.mxu1 %v1400_v50  ;;  %v1441_v50 = vld [vmem:[%s1811_s5 + $0xa0] sm:$0xff]  }
  0x2b   :  { %1327 = vmatpush3.bf16.msra.mxu0 %v1385_v39  ;;  %v1430_v39 = vld [vmem:[%s1811_s5 + $0x88] sm:$0xff]  }
  0x2c   :  { %1328 = vmatprep.subr.bf16.mxu0 %v1448_v33 }
  0x2d   :  { %617 = vmatpush1.bf16.msra.mxu1 %v1398_v51  ;;  %v1442_v51 = vld [vmem:[%s1811_s5 + $0xe8] sm:$0xff]  }
  0x2e   :  { %618 = vmatprep.subr.bf16.mxu1 %v1403_v52  ;;  %v1443_v52 = vld [vmem:[%s1811_s5 + $0xa8] sm:$0xff]  }
  0x2f   :  { %1329 = vmatpush3.bf16.msra.mxu0 %v1386_v40  ;;  %v1431_v40 = vld [vmem:[%s1811_s5 + $0x28] sm:$0xff]  }
  0x30   :  { %1330 = vmatprep.subr.bf16.mxu0 %v1448_v33 }
  0x31   :  { %619 = vmatpush1.bf16.msra.mxu1 %v1401_v53  ;;  %v1444_v53 = vld [vmem:[%s1811_s5 + $0xf0] sm:$0xff]  }
  0x32   :  { %655 = vmatprep.subr.bf16.mxu1 %v1406_v54  ;;  %v1445_v54 = vld [vmem:[%s1811_s5 + $0xb0] sm:$0xff]  }
  0x33   :  { %1331 = vmatpush3.bf16.msra.mxu0 %v1387_v41  ;;  %v1432_v41 = vld [vmem:[%s1811_s5 + $0xd0] sm:$0xff]  }
  0x34   :  { %1332 = vmatprep.subr.bf16.mxu0 %v1448_v33 }
  0x37   :  { %1333 = vmatpush3.bf16.msra.mxu0 %v1388_v42  ;;  %v1433_v42 = vld [vmem:[%s1811_s5 + $0x70] sm:$0xff]  }
  0x38   :  { %1334 = vmatprep.subr.bf16.mxu0 %v1448_v33 }
  0x3b   :  { %1335 = vmatpush3.bf16.msra.mxu0 %v1389_v43  ;;  %v1434_v43 = vld [vmem:[%s1811_s5 + $0x90] sm:$0xff]  }
  0x3c   :  { %1336 = vmatprep.subr.bf16.mxu0 %v1448_v33  ;;  %v1410_v33 = vld [vmem:[%s1810_s3 + $0x48] ss:$16 sps:$4 sm:$0xff]  }
  0x3f   :  { %1337 = vmatpush3.bf16.msra.mxu0 %v1390_v44  ;;  %v1435_v44 = vld [vmem:[%s1811_s5 + $0x30] sm:$0xff]  }
  0x40   :  { %1278 = vmatprep.subr.bf16.mxu0 %v1416_v56  ;;  %v1447_v56 = vld [vmem:[%s1811_s5 + $0xb8] sm:$0xff]  }
  0x42   :  { %1339 = vmatmul.mubr.bf16.vlgmr.msra.gmra.mrb[4].mxu0 %v1391_v45  ;;  %v1436_v45 = vld [vmem:[%s1811_s5 + $0xd8] sm:$0xff]  }
  0x43   :  { %1279 = vmatpush3.bf16.msra.mxu0 %v1417_v57  ;;  %v749_v57 = vld [vmem:[%s1813_s4] sm:$0xff] }
  0x44   :  { %1280 = vmatprep.subr.bf16.mxu0 %v1418_v58  ;;  %v750_v58 = vld [vmem:[%s1813_s4 + $0x8] sm:$0xff] }
  0x47   :  { %1281 = vmatpush3.bf16.msra.mxu0 %v1419_v59 }
  0x48   :  { %1282 = vmatprep.subr.bf16.mxu0 %v1420_v60  ;;  %v753_v60 = vld [vmem:[%s1813_s4 + $0x20] sm:$0xff] }
  0x4b   :  { %1283 = vmatpush3.bf16.msra.mxu0 %v1421_v61 }
  0x4c   :  { %1284 = vmatprep.subr.bf16.mxu0 %v1422_v62 }
  0x4f   :  { %1285 = vmatpush3.bf16.msra.mxu0 %v1423_v63  ;;  %v754_v63 = vld [vmem:[%s1813_s4 + $0x28] sm:$0xff] }
  0x50   :  { %1286 = vmatprep.subr.bf16.mxu0 %v1425_v0 }
  0x53   :  { %1287 = vmatpush3.bf16.msra.mxu0 %v1427_v1 }
  0x54   :  { %1288 = vmatprep.subr.bf16.mxu0 %v1429_v2 }
  0x57   :  { %1289 = vmatpush3.bf16.msra.mxu0 %v1431_v40 }
  0x58   :  { %1290 = vmatprep.subr.bf16.mxu0 %v1433_v42 }
  0x5b   :  { %1291 = vmatpush3.bf16.msra.mxu0 %v1435_v44 }
  0x5c   :  { %1292 = vmatprep.subr.bf16.mxu0 %v1437_v46 }
  0x5f   :  { %1293 = vmatpush3.bf16.msra.mxu0 %v1439_v48 }
  0xf5   :  { %v1241_v3 = vpop.f32.mrb[0].mxu0 }
  0xf6   :  { %v1242_v5 = vpop.f32.mrb[1].mxu0 }
  0xf7   :  { %v1243_v6 = vadd.f32 %v1242_v5, %v1241_v3  ;;  %v1244_v7 = vpop.f32.mrb[2].mxu0  ;;  %v1263_v8 = vpop.f32.mrb[0].mxu1 }
  0xf8   :  { %v1245_v9 = vpop.f32.mrb[3].mxu0  ;;  %v1264_v12 = vpop.f32.mrb[1].mxu1 }
  0xf9   :  { %v421_v10 = vadd.f32 %v1243_v6, %v1128_v4  ;;  %v1246_v11 = vadd.f32 %v1245_v9, %v1244_v7  ;;  %v1265_v13 = vadd.f32 %v1264_v12, %v1263_v8  ;;  %v1266_v14 = vpop.f32.mrb[2].mxu1  ;;  %v752_v12 = vld [vmem:[%s1813_s4 + $0x18] sm:$0xff] }
  0xfa   :  { %v1267_v16 = vpop.f32.mrb[3].mxu1 }
  0xfb   :  { %v424_v15 = vadd.f32 %v1246_v11, %v1128_v4  ;;  %v1268_v17 = vadd.f32 %v1267_v16, %v1266_v14  ;;  %v462_v18 = vadd.f32 %v1265_v13, %v421_v10  ;;  %v751_v11 = vld [vmem:[%s1813_s4 + $0x10] sm:$0xff] }
  0xfc   :  { %v755_v14 = vld [vmem:[%s1813_s4 + $0x30] sm:$0xff] }
  0xfd   :  { %v465_v19 = vadd.f32 %v1268_v17, %v424_v15  ;;  %v756_v17 = vld [vmem:[%s1813_s4 + $0x38] sm:$0xff] }
 0x115   :  { %v502_v20 = vpop.f32.mrb[4].mxu0 }
 0x116   :  { %v503_v21 = vadd.f32 %v502_v20, %v462_v18  ;;  %v1340_v22 = vpop.f32.mrb[5].mxu0 }
 0x117   :  { %v505_v23 = vpop.f32.mrb[6].mxu0 }
 0x118   :  { %v506_v24 = vadd.f32 %v505_v23, %v465_v19  ;;  %v1341_v25 = vpop.f32.mrb[7].mxu0  ;;  %v509_v26 = vmax.f32 %v503_v21, 0.0 }
 0x11a   :  { %v510_v27 = vmax.f32 %v506_v24, 0.0 }
 0x11c   :  { %v511_v29 = vpack.c.bf16 %v510_v27, %v509_v26 }
 0x11e   :  { %1190 = vmatmul.mubr.msk.bf16.vlgmr.msra.gmra.mrb[4].mxu1 %vm608_vm1, %v511_v29 }
 0x11f   :  { %656 = vmatpush1.bf16.msra.mxu1 %v1404_v28  ;;  %687 = vmatprep.mubr.bf16.mxu1 %v1450_v55  ;;  %v1446_v55 = vld [vmem:[%s1811_s5 + $0xf8] sm:$0xff]  }
 0x120   :  { %657 = vmatprep.subr.bf16.mxu1 %v1409_v30 }
 0x123   :  { %658 = vmatpush1.bf16.msra.mxu1 %v1407_v31 }
 0x124   :  { %659 = vmatprep.subr.bf16.mxu1 %v1412_v32 }
 0x127   :  { %660 = vmatpush1.bf16.msra.mxu1 %v1410_v33 }
 0x128   :  { %661 = vmatprep.subr.bf16.mxu1 %v1415_v34 }
 0x12b   :  { %662 = vmatpush1.bf16.msra.mxu1 %v1413_v35  ;;  %v1192_v35 = vld [vmem:[%s1814_s6] ss:$0 sm:$0xff] }
 0x12c   :  { %1300 = vmatprep.subr.bf16.mxu1 %v1424_v36 }
 0x12e   :  { %1191 = vmatmul.mubr.msk.bf16.vlgmr.msra.gmra.mrb[8].mxu1 %vm608_vm1, %v511_v29 }
 0x12f   :  { %1301 = vmatpush3.bf16.msra.mxu1 %v1426_v37 }
 0x130   :  { %1302 = vmatprep.subr.bf16.mxu1 %v1428_v38 }
 0x133   :  { %1303 = vmatpush3.bf16.msra.mxu1 %v1430_v39 }
 0x134   :  { %1304 = vmatprep.subr.bf16.mxu1 %v1432_v41 }
 0x137   :  { %1305 = vmatpush3.bf16.msra.mxu1 %v1434_v43 }
 0x138   :  { %1306 = vmatprep.subr.bf16.mxu1 %v1436_v45 }
 0x13b   :  { %1307 = vmatpush3.bf16.msra.mxu1 %v1438_v47 }
 0x13c   :  { %1308 = vmatprep.subr.bf16.mxu1 %v1440_v49 }
 0x13f   :  { %1309 = vmatpush3.bf16.msra.mxu1 %v1441_v50 }
 0x140   :  { %1310 = vmatprep.subr.bf16.mxu1 %v1442_v51 }
 0x143   :  { %1311 = vmatpush3.bf16.msra.mxu1 %v1443_v52 }
 0x144   :  { %1312 = vmatprep.subr.bf16.mxu1 %v1444_v53 }
 0x147   :  { %1313 = vmatpush3.bf16.msra.mxu1 %v1445_v54 }
 0x148   :  { %1314 = vmatprep.subr.bf16.mxu1 %v1446_v55 }
 0x14b   :  { %1315 = vmatpush3.bf16.msra.mxu1 %v1447_v56 }
 0x1f1   :  { %v646_v59 = vpop.f32.mrb[4].mxu1 }
 0x1f2   :  { %v757_v61 = vadd.f32 %v749_v57, %v646_v59  ;;  %v648_v62 = vpop.f32.mrb[5].mxu1 }
 0x1f3   :  { %v758_v0 = vadd.f32 %v750_v58, %v648_v62  ;;  %v650_v1 = vpop.f32.mrb[6].mxu1 }
 0x1f4   :  { %v761_v2 = vadd.f32 %v753_v60, %v650_v1  ;;  %v652_v3 = vpop.f32.mrb[7].mxu1  ;;  %v765_v5 = vmax.f32 %v757_v61, 0.0 }
 0x1f5   :  { %v762_v4 = vadd.f32 %v754_v63, %v652_v3  ;;  %v766_v7 = vmax.f32 %v758_v0, 0.0 }
 0x1f6   :  { %v769_v6 = vmax.f32 %v761_v2, 0.0 }
 0x1f7   :  { %v770_v8 = vmax.f32 %v762_v4, 0.0 }
 0x1f8   :  { %v773_v9 = vpack.c.bf16 %v769_v6, %v765_v5 }
 0x1f9   :  { %v774_v10 = vpack.c.bf16 %v770_v8, %v766_v7 }
 0x1fb   :  { %1072 = vmatprep.mubr.bf16.mxu0 %v774_v10 }
 0x1fc   :  { %1073 = vmatmul.mubr.bf16.vlgmr.msra.gmra.mrb[8].mxu0 %v773_v9 }
 0x201   :  { %v689_v13 = vpop.f32.mrb[8].mxu1 }
 0x202   :  { %v759_v15 = vadd.f32 %v751_v11, %v689_v13  ;;  %v691_v16 = vpop.f32.mrb[9].mxu1 }
 0x203   :  { %v760_v18 = vadd.f32 %v752_v12, %v691_v16  ;;  %v693_v19 = vpop.f32.mrb[10].mxu1 }
 0x204   :  { %v763_v20 = vadd.f32 %v755_v14, %v693_v19  ;;  %v695_v21 = vpop.f32.mrb[11].mxu1  ;;  %v767_v23 = vmax.f32 %v759_v15, 0.0 }
 0x205   :  { %v764_v22 = vadd.f32 %v756_v17, %v695_v21  ;;  %v768_v25 = vmax.f32 %v760_v18, 0.0 }
 0x206   :  { %v771_v24 = vmax.f32 %v763_v20, 0.0 }
 0x207   :  { %v772_v26 = vmax.f32 %v764_v22, 0.0 }
 0x208   :  { %v775_v27 = vpack.c.bf16 %v771_v24, %v767_v23 }
 0x209   :  { %v776_v28 = vpack.c.bf16 %v772_v26, %v768_v25 }
 0x20b   :  { %1113 = vmatprep.mubr.bf16.mxu1 %v776_v28 }
 0x20c   :  { %1114 = vmatmul.mubr.bf16.vlgmr.msra.gmra.mrb[12].mxu1 %v775_v27 }
 0x2cf   :  { %v1294_v29 = vpop.f32.mrb[8].mxu0 }
 0x2d0   :  { %v1295_v30 = vpop.f32.mrb[9].mxu0 }
 0x2d1   :  { %v1296_v31 = vadd.f32 %v1295_v30, %v1294_v29  ;;  %v1297_v32 = vpop.f32.mrb[10].mxu0 }
 0x2d2   :  { %v1298_v33 = vpop.f32.mrb[11].mxu0 }
 0x2d3   :  { %v1299_v34 = vadd.f32 %v1298_v33, %v1297_v32  ;;  %v1075_v38 = vadd.f32 %v1296_v31, %v1192_v35 }
 0x2d5   :  { %v1078_v42 = vadd.f32 %v1299_v34, %v1192_v35 }
 0x2df   :  { %v1316_v36 = vpop.f32.mrb[12].mxu1 }
 0x2e0   :  { %v1317_v37 = vpop.f32.mrb[13].mxu1 }
 0x2e1   :  { %v1318_v39 = vadd.f32 %v1317_v37, %v1316_v36  ;;  %v1319_v40 = vpop.f32.mrb[14].mxu1 }
 0x2e2   :  { %v1320_v41 = vpop.f32.mrb[15].mxu1 }
 0x2e3   :  { %v1116_v43 = vadd.f32 %v1318_v39, %v1075_v38  ;;  %v1321_v44 = vadd.f32 %v1320_v41, %v1319_v40 }
 0x2e5   :  { %1122 = vst [vmem:[%s1815_s7] sm:$0xff] %v1116_v43  ;;  %v1119_v45 = vadd.f32 %v1321_v44, %v1078_v42 }
 0x2e7   :  { %1123 = vst [vmem:[%s1815_s7 + $0x8] sm:$0xff] %v1119_v45 }

</bundles_post_ra>
